<compile_context>
chip_gen: v7x
topology: tpu7x:2x2x1
jax: 0.10.0
libtpu: 0.0.40
codegen_flags: <defaults>
</compile_context>

<pallas_src>
import functools
import math

import jax
import jax.numpy as jnp
from jax import lax
from jax.experimental import pallas as pl
from jax.experimental.pallas import tpu as pltpu

LANES = 128
MAX_CHUNK_ROWS = 1024                      # rows per in-kernel compute chunk
_ACC_ROW_CANDIDATES = (64, 32, 16, 8, 1)   # accumulator sublane widths (widest first)


def _is_small_int_alpha(alpha):
    return float(alpha) == float(int(alpha)) and 0 <= int(alpha) <= 8


def _weighted(base, alpha):
    """weighted = base * (1 + |base|)**alpha with base = d*d >= 0 (|base| == base).

    For small integer alpha, strength-reduce the pow to repeated VPU multiplies so
    the kernel stays HBM-bound instead of pushing 2 EUP transcendentals per element.
    """
    ai = int(alpha)
    if _is_small_int_alpha(alpha):
        if ai == 0:
            return base
        w = 1.0 + base
        wp = w
        for _ in range(ai - 1):
            wp = wp * w
        return base * wp
    # non-integer alpha: fall back to pow (exp/log on the EUP)
    return base * (1.0 + base) ** jnp.float32(alpha)


def _tpu_vmem_capacity_bytes():
    try:
        info = pltpu.get_tpu_info()
        v = getattr(info, "vmem_capacity_bytes", None)
        if isinstance(v, int) and v > 0:
            return int(v)
    except Exception:
        pass
    return 128 << 20  # v5e/v6e default; safe (conservative tiles) if query fails


def _detect_num_tensorcores():
    """TensorCores a leading 'parallel' grid axis can shard over (v7x/megacore=2).

    Correctness never depends on this: a wrong answer only changes how the outer
    grid axis is split, which also runs fine sequentially on a single core.
    """
    try:
        info = pltpu.get_tpu_info()
        for name in ("num_cores", "core_count", "num_tensorcores", "tensorcore_count"):
            v = getattr(info, name, None)
            if isinstance(v, int) and 1 <= v <= 2:
                return v
    except Exception:
        pass
    try:
        kind = jax.devices()[0].device_kind.lower()
        if "v7" in kind or "v5p" in kind or "v4" in kind:
            return 2
    except Exception:
        pass
    return 1


def _wrl_kernel(rec_ref, org_ref, out_ref, *, alpha, rows, block_rows, chunk_rows,
                acc_rows, tiles_per_core, need_mask):
    c = pl.program_id(0)          # core (parallel) axis
    i = pl.program_id(1)          # tile (reduction / arbitrary) axis
    n_chunks = block_rows // chunk_rows

    # Output block index is constant along i -> it stays resident and acts as the
    # per-core accumulator. Zero it at the start of each core's reduction.
    @pl.when(i == 0)
    def _():
        out_ref[...] = jnp.zeros_like(out_ref)

    block_start_row = (c * tiles_per_core + i) * block_rows

    def process(start_row, masked):
        rec = rec_ref[pl.ds(start_row, chunk_rows), :].astype(jnp.float32)
        org = org_ref[pl.ds(start_row, chunk_rows), :].astype(jnp.float32)
        d = rec - org
        base = d * d
        weighted = _weighted(base, alpha)
        if masked:
            # Garbage rows past `rows` may be Inf/NaN; jnp.where is a true select,
            # so they never reach the accumulator.
            row_ids = lax.broadcasted_iota(jnp.int32, (chunk_rows, LANES), 0)
            valid = (block_start_row + start_row + row_ids) < rows
            weighted = jnp.where(valid, weighted, 0.0)
        # VPU-only accumulation into a wide (acc_rows, 128) slab: multiple
        # independent add chains, no per-step cross-lane reduce.
        partial = jnp.sum(weighted.reshape(-1, acc_rows, LANES), axis=0)
        out_ref[...] += partial.reshape(1, acc_rows, LANES)

    def run_chunks(masked):
        if n_chunks == 1:
            process(0, masked)
        else:
            def body(k, carry):
                process(pl.multiple_of(k * chunk_rows, chunk_rows), masked)
                return carry
            lax.fori_loop(0, n_chunks, body, 0)

    if need_mask:
        # Mask work only executes on the (at most one) ragged / out-of-range block.
        is_ragged = block_start_row + block_rows > rows

        @pl.when(jnp.logical_not(is_ragged))
        def _():
            run_chunks(False)

        @pl.when(is_ragged)
        def _():
            run_chunks(True)
    else:
        run_chunks(False)


def weighted_reconstruction_loss(reconstructed, original, alpha=2.0, *,
                                 tile_rows=None, num_cores=None):
    """Pallas TPU implementation of WeightedReconstructionLoss.forward.

    Assumes reconstructed.shape == original.shape.
    """
    # TODO(synk): F.interpolate(mode='nearest') resize path for mismatched shapes is
    # not implemented; shapes are required to match (the common training case).
    assert reconstructed.shape == original.shape, "shape mismatch not supported"

    n_elems = int(reconstructed.size)
    if n_elems == 0:
        return jnp.float32(float("nan"))  # matches torch.mean of an empty tensor

    rec_flat = reconstructed.reshape(-1)
    org_flat = original.reshape(-1)

    rows = n_elems // LANES
    n_main = rows * LANES
    tail = n_elems - n_main

    # <=127-element ragged tail: tiny plain-JAX partial sum (no O(n) padding copy).
    tail_sum = None
    if tail:
        d_t = rec_flat[n_main:].astype(jnp.float32) - org_flat[n_main:].astype(jnp.float32)
        b_t = d_t * d_t
        tail_sum = jnp.sum(b_t * (1.0 + b_t) ** jnp.float32(alpha))

    if rows == 0:
        return (tail_sum / jnp.float32(n_elems)).astype(jnp.float32)

    if tail:
        # TODO(synk): the prefix slice may still materialize a copy in XLA; a fully
        # zero-copy ragged path would need a 1-D flat-index mask inside the kernel.
        rec_main = rec_flat[:n_main]
        org_main = org_flat[:n_main]
    else:
        rec_main, org_main = rec_flat, org_flat
    rec2 = rec_main.reshape(rows, LANES)
    org2 = org_main.reshape(rows, LANES)

    # ---- generation-aware tiling -------------------------------------------
    vmem_cap = _tpu_vmem_capacity_bytes()
    if tile_rows is None:
        # ~1/16 of VMEM per input block (2 inputs x double-buffered = ~1/4 of VMEM):
        # 8192 rows on 64 MiB (v7x), 16384 rows on 128 MiB (v5e/v6e).
        target_block_bytes = vmem_cap // 16
        tile_rows = (target_block_bytes // (LANES * 4)) // MAX_CHUNK_ROWS * MAX_CHUNK_ROWS
        tile_rows = max(8 * MAX_CHUNK_ROWS, min(16 * MAX_CHUNK_ROWS, tile_rows))

    block_rows = tile_rows if rows >= tile_rows else rows   # full-dim block if small
    n_tiles = pl.cdiv(rows, block_rows)

    if num_cores is None:
        num_cores = _detect_num_tensorcores()
    num_cores = max(1, min(int(num_cores), n_tiles))
    tiles_per_core = pl.cdiv(n_tiles, num_cores)

    # In-kernel chunking of the block bounds elementwise intermediates in VMEM.
    chunk_rows = math.gcd(block_rows, MAX_CHUNK_ROWS) if block_rows % 8 == 0 else block_rows
    acc_rows = next(c for c in _ACC_ROW_CANDIDATES if chunk_rows % c == 0)

    need_mask = (rows % block_rows != 0) or (num_cores * tiles_per_core != n_tiles)
    need_clamp = num_cores * tiles_per_core > n_tiles

    if need_clamp:
        def in_map(c, i):
            # Tiles past the real end read (and then fully mask) the last real tile.
            return (jnp.minimum(c * tiles_per_core + i, n_tiles - 1), 0)
    else:
        def in_map(c, i):
            return (c * tiles_per_core + i, 0)

    kernel = functools.partial(
        _wrl_kernel, alpha=float(alpha), rows=rows, block_rows=block_rows,
        chunk_rows=chunk_rows, acc_rows=acc_rows, tiles_per_core=tiles_per_core,
        need_mask=need_mask)

    rec_item = jnp.dtype(rec2.dtype).itemsize
    org_item = jnp.dtype(org2.dtype).itemsize
    # 2 double-buffered input blocks + headroom for internal/elementwise scratch.
    buf_bytes = 2 * block_rows * LANES * (rec_item + org_item)
    vmem_limit = max(32 << 20, min(buf_bytes + (16 << 20), vmem_cap - (8 << 20)))

    is_int_alpha = _is_small_int_alpha(alpha)
    cost = pl.CostEstimate(
        flops=6 * n_elems,
        transcendentals=0 if is_int_alpha else 2 * n_elems,
        bytes_accessed=(rec_item + org_item) * n_elems
                       + num_cores * acc_rows * LANES * 4,
    )

    # TODO(synk): optionally sweep pipeline_mode=pl.Buffered(3) on the input specs if
    # a profile shows exposed DMA at step boundaries (re-check VMEM budget on v7x).
    partial_sums = pl.pallas_call(
        kernel,
        out_shape=jax.ShapeDtypeStruct((num_cores, acc_rows, LANES), jnp.float32),
        grid_spec=pltpu.PrefetchScalarGridSpec(
            num_scalar_prefetch=0,
            grid=(num_cores, tiles_per_core),
            in_specs=[
                pl.BlockSpec((block_rows, LANES), in_map),
                pl.BlockSpec((block_rows, LANES), in_map),
            ],
            out_specs=pl.BlockSpec((1, acc_rows, LANES), lambda c, i: (c, 0, 0)),
        ),
        compiler_params=pltpu.CompilerParams(
            dimension_semantics=("parallel", "arbitrary"),
            vmem_limit_bytes=int(vmem_limit),
        ),
        cost_estimate=cost,
    )(rec2, org2)

    total = jnp.sum(partial_sums)
    if tail_sum is not None:
        total = total + tail_sum
    return total / jnp.float32(n_elems)


def _reference(reconstructed, original, alpha=2.0):
    base = (reconstructed.astype(jnp.float32) - original.astype(jnp.float32)) ** 2
    weighted = base * (1.0 + jnp.abs(base)) ** alpha
    return jnp.mean(weighted)


if __name__ == "__main__":
    key = jax.random.PRNGKey(0)
    k1, k2, k3, k4, k5, k6 = jax.random.split(key, 6)

    # Primary test: NCHW, matching PyTorch conv-style inputs (128-aligned size).
    shape = (2, 4, 16, 16)
    reconstructed = jax.random.normal(k1, shape, dtype=jnp.float32)
    original = jax.random.normal(k2, shape, dtype=jnp.float32)
    loss = jax.block_until_ready(weighted_reconstruction_loss(reconstructed, original, alpha=2.0))
    ref = _reference(reconstructed, original, alpha=2.0)
    assert jnp.allclose(loss, ref, rtol=1e-5, atol=1e-5), (loss, ref)

    # Multi-tile grid, ragged (masked) last tile, forced 2-way core split
    # (runs sequentially and stays correct on single-TensorCore chips).
    shape2 = (2, 3, 20, 16)  # 1920 elems -> 15 rows; tile_rows=8 -> 2 tiles, masked tail rows
    rec2 = jax.random.normal(k3, shape2, dtype=jnp.float32)
    org2 = jax.random.normal(k4, shape2, dtype=jnp.float32)
    loss2 = jax.block_until_ready(
        weighted_reconstruction_loss(rec2, org2, alpha=2.0, tile_rows=8, num_cores=2))
    ref2 = _reference(rec2, org2, alpha=2.0)
    assert jnp.allclose(loss2, ref2, rtol=1e-5, atol=1e-5), (loss2, ref2)

    # Non-128-aligned element count: kernel on aligned prefix + plain-JAX tail.
    shape3 = (2, 3, 10, 11)  # 660 elems -> 5 rows + 20-element tail
    rec3 = jax.random.normal(k5, shape3, dtype=jnp.float32)
    org3 = jax.random.normal(k6, shape3, dtype=jnp.float32)
    loss3 = jax.block_until_ready(weighted_reconstruction_loss(rec3, org3, alpha=2.0))
    ref3 = _reference(rec3, org3, alpha=2.0)
    assert jnp.allclose(loss3, ref3, rtol=1e-5, atol=1e-5), (loss3, ref3)

    print("KERNEL_OK")
</pallas_src>

<mosaic_0001>
module attributes {stable_mosaic.version = 11 : i64} {
  func.func @_wrl_kernel(%arg0: i32, %arg1: i32, %arg2: memref<16x128xf32, #tpu.memory_space<vmem>>, %arg3: memref<16x128xf32, #tpu.memory_space<vmem>>, %arg4: memref<1x16x128xf32, #tpu.memory_space<vmem>>) attributes {dimension_semantics = [#tpu.dimension_semantics<parallel>, #tpu.dimension_semantics<arbitrary>], iteration_bounds = array<i64: 1, 1>, scalar_prefetch = 0 : i64, scratch_operands = 0 : i64, tpu.core_type = #tpu.core_type<tc>, window_params = [{transform_indices = @transform_0, window_bounds = array<i64: 16, 128>}, {transform_indices = @transform_1, window_bounds = array<i64: 16, 128>}, {transform_indices = @transform_2, window_bounds = array<i64: 1, 16, 128>}]} {
    %c0_i32 = arith.constant 0 : i32
    %0 = arith.cmpi eq, %arg1, %c0_i32 : i32
    %1 = arith.extui %0 : i1 to i32
    %c0_i32_0 = arith.constant 0 : i32
    %2 = arith.cmpi ne, %1, %c0_i32_0 : i32
    scf.if %2 {
      %cst_11 = arith.constant 0.000000e+00 : f32
      %17 = vector.broadcast %cst_11 : f32 to vector<1x16x128xf32>
      %c0_12 = arith.constant 0 : index
      %c0_13 = arith.constant 0 : index
      %c0_14 = arith.constant 0 : index
      %18 = vector.load %arg4[%c0_12, %c0_13, %c0_14] : memref<1x16x128xf32, #tpu.memory_space<vmem>>, vector<1x16x128xf32>
      tpu.vector_store %arg4[%c0_12, %c0_13, %c0_14], %17 {strides = array<i32>} : memref<1x16x128xf32, #tpu.memory_space<vmem>>, vector<1x16x128xf32>,
    } else {
    }
    %c0 = arith.constant 0 : index
    %c0_1 = arith.constant 0 : index
    %3 = vector.load %arg2[%c0, %c0_1] : memref<16x128xf32, #tpu.memory_space<vmem>>, vector<16x128xf32>
    %c0_2 = arith.constant 0 : index
    %c0_3 = arith.constant 0 : index
    %4 = vector.load %arg3[%c0_2, %c0_3] : memref<16x128xf32, #tpu.memory_space<vmem>>, vector<16x128xf32>
    %5 = arith.subf %3, %4 : vector<16x128xf32>
    %6 = arith.mulf %5, %5 : vector<16x128xf32>
    %cst = arith.constant 1.000000e+00 : f32
    %7 = vector.broadcast %cst : f32 to vector<16x128xf32>
    %8 = arith.addf %7, %6 : vector<16x128xf32>
    %9 = arith.mulf %8, %8 : vector<16x128xf32>
    %10 = arith.mulf %6, %9 : vector<16x128xf32>
    %11 = vector.shape_cast %10 : vector<16x128xf32> to vector<1x16x128xf32>
    %cst_4 = arith.constant dense<0.000000e+00> : vector<16x128xf32>
    %12 = vector.multi_reduction <add>, %11, %cst_4 [0] : vector<1x16x128xf32> to vector<16x128xf32>
    %c0_5 = arith.constant 0 : index
    %c0_6 = arith.constant 0 : index
    %c0_7 = arith.constant 0 : index
    %13 = vector.load %arg4[%c0_5, %c0_6, %c0_7] : memref<1x16x128xf32, #tpu.memory_space<vmem>>, vector<1x16x128xf32>
    %14 = vector.shape_cast %12 : vector<16x128xf32> to vector<1x16x128xf32>
    %15 = arith.addf %13, %14 : vector<1x16x128xf32>
    %c0_8 = arith.constant 0 : index
    %c0_9 = arith.constant 0 : index
    %c0_10 = arith.constant 0 : index
    %16 = vector.load %arg4[%c0_8, %c0_9, %c0_10] : memref<1x16x128xf32, #tpu.memory_space<vmem>>, vector<1x16x128xf32>
    tpu.vector_store %arg4[%c0_8, %c0_9, %c0_10], %15 {strides = array<i32>} : memref<1x16x128xf32, #tpu.memory_space<vmem>>, vector<1x16x128xf32>,
    return
  }
  func.func @transform_0(%arg0: i32, %arg1: i32) -> (i32, i32) {
    %c1_i32 = arith.constant 1 : i32
    %0 = arith.muli %arg0, %c1_i32 : i32
    %1 = arith.addi %0, %arg1 : i32
    %c0_i32 = arith.constant 0 : i32
    %c0_i32_0 = arith.constant 0 : i32
    return %1, %c0_i32 : i32, i32
  }
  func.func @transform_1(%arg0: i32, %arg1: i32) -> (i32, i32) {
    %c1_i32 = arith.constant 1 : i32
    %0 = arith.muli %arg0, %c1_i32 : i32
    %1 = arith.addi %0, %arg1 : i32
    %c0_i32 = arith.constant 0 : i32
    %c0_i32_0 = arith.constant 0 : i32
    return %1, %c0_i32 : i32, i32
  }
  func.func @transform_2(%arg0: i32, %arg1: i32) -> (i32, i32, i32) {
    %c0_i32 = arith.constant 0 : i32
    %c0_i32_0 = arith.constant 0 : i32
    %c0_i32_1 = arith.constant 0 : i32
    return %arg0, %c0_i32, %c0_i32_0 : i32, i32, i32
  }
}

</mosaic_0001>

<bundles_post_ra>
// kernel: tpu_custom_call.1
= control target key start
LH: loop header
LB: loop body
LE: loop exit
PB: predicated region body
PF: predicated region fallthrough
CT: control target
= control target key end

     0   :  { %7 = vsyncpa [#allocation3], 0  ;;  %s241_s0 = inlined_call_operand.hbm [shape: f32[16,128], index: 0, kind: input, shape index: {}]   ;;  %s242_s1 = inlined_call_operand.hbm [shape: f32[16,128], index: 1, kind: input, shape index: {}]   ;;  %s243_s2 = inlined_call_operand.hbm [shape: f32[1,16,128], index: 2, kind: output, shape index: {}]  }
   0x1   :  { %8 = vsyncpa [#allocation6], 0 }
   0x2   :  { %9 = vsyncpa [#allocation4], 0  ;;  %s176_s9 = smov [#allocation2]   ;;  %s104_s13 = scalar_lea.hbm %s241_s0, 256 }
   0x3   :  { %s19_s10 = sshll.u32 %s176_s9, 4  ;;  %p105_p0 = scmp.ne.s32.totalorder %s241_s0, %s104_s13  ;;  %s20_s10 = int_to_ptr.vmem [resolvable:$true] %s19_s10 }
   0x4   :  { %p108_p1 = scmp.lt.u32.totalorder %s104_s13, %s241_s0 }
   0x6   :  { %p110_p2 = pnand %p108_p1, %p105_p0 }
   0x8   :  { %113 = shalt.err (!%p110_p2)
}
   0x9   :  { %s114_s18 = scalar_lea.vmem %s20_s10, 256  ;;  %p119_p4 = scmp.lt.s32.totalorder %s20_s10, %s20_s10 }
   0xa   :  { %p115_p3 = scmp.ne.s32.totalorder %s20_s10, %s114_s18  ;;  %p120_p5 = scmp.lt.s32.totalorder %s114_s18, %s114_s18 }
   0xc   :  { %p121_p6 = por %p120_p5, %p119_p4 }
   0xe   :  { %p122_p7 = pnand %p121_p6, %p115_p3 }
  0x10   :  { %125 = shalt.err (!%p122_p7)
}
  0x11   :  { %s177_s19 = smov 128   ;;  %s178_s20 = smov 8  }
  0x12   :  { %25 = dma.hbm_to_vmem [thread:$0]  %s241_s0, 256, %s20_s10, [#allocation3], %s177_s19, %s177_s19, %s178_s20  }
  0x13   :  { %s179_s23 = smov [#allocation5]   ;;  %s126_s27 = scalar_lea.hbm %s242_s1, 256 }
  0x14   :  { %s35_s24 = sshll.u32 %s179_s23, 4  ;;  %p127_p8 = scmp.ne.s32.totalorder %s242_s1, %s126_s27  ;;  %s36_s24 = int_to_ptr.vmem [resolvable:$true] %s35_s24 }
  0x15   :  { %p130_p9 = scmp.lt.u32.totalorder %s126_s27, %s242_s1 }
  0x17   :  { %p132_p10 = pnand %p130_p9, %p127_p8 }
  0x19   :  { %135 = shalt.err (!%p132_p10)
}
  0x1a   :  { %s136_s4 = scalar_lea.vmem %s36_s24, 256  ;;  %p141_p12 = scmp.lt.s32.totalorder %s36_s24, %s36_s24 }
  0x1b   :  { %p137_p11 = scmp.ne.s32.totalorder %s36_s24, %s136_s4  ;;  %p142_p13 = scmp.lt.s32.totalorder %s136_s4, %s136_s4 }
  0x1d   :  { %p143_p0 = por %p142_p13, %p141_p12 }
  0x1f   :  { %p144_p1 = pnand %p143_p0, %p137_p11 }
  0x21   :  { %147 = shalt.err (!%p144_p1)
}
  0x22   :  { %41 = dma.hbm_to_vmem [thread:$0]  %s242_s1, 256, %s36_s24, [#allocation6], %s177_s19, %s177_s19, %s178_s20  }
  0x23   :  { %170 = dma.done.wait [#allocation3], 256  }
  0x24   :  { %171 = vsyncadd [#allocation3], 4294967040 }
  0x25   :  { %172 = dma.done.wait [#allocation6], 256  }
  0x26   :  { %173 = vsyncadd [#allocation6], 4294967040  ;;  %v58_v0 = vld [vmem:[#allocation2] sm:$0xff]  ;;  %v60_v1 = vld [vmem:[#allocation5] sm:$0xff]  ;;  %s180_s6 = smov [#allocation7]  }
  0x27   :  { %v59_v2 = vld [vmem:[#allocation2 + $0x8] sm:$0xff]  ;;  %v62_v3 = vsub.f32 %v58_v0, %v60_v1  ;;  %v61_v4 = vld [vmem:[#allocation5 + $0x8] sm:$0xff]  ;;  %s85_s7 = sshll.u32 %s180_s6, 4  ;;  %s86_s7 = int_to_ptr.vmem [resolvable:$true] %s85_s7 }
  0x28   :  { %v63_v5 = vsub.f32 %v59_v2, %v61_v4  ;;  %s148_s1 = scalar_lea.vmem %s86_s7, 256  ;;  %p153_p3 = scmp.lt.s32.totalorder %s86_s7, %s86_s7 }
  0x29   :  { %v64_v6 = vmul.f32 %v62_v3, %v62_v3  ;;  %p149_p2 = scmp.ne.s32.totalorder %s86_s7, %s148_s1  ;;  %p154_p4 = scmp.lt.s32.totalorder %s148_s1, %s148_s1 }
  0x2a   :  { %v65_v7 = vmul.f32 %v63_v5, %v63_v5 }
  0x2b   :  { %v66_v8 = vadd.f32 1.0, %v64_v6  ;;  %p155_p5 = por %p154_p4, %p153_p3 }
  0x2c   :  { %v67_v9 = vadd.f32 1.0, %v65_v7 }
  0x2d   :  { %v68_v10 = vmul.f32 %v66_v8, %v66_v8  ;;  %p156_p6 = pnand %p155_p5, %p149_p2 }
  0x2e   :  { %v69_v11 = vmul.f32 %v67_v9, %v67_v9 }
  0x2f   :  { %v70_v12 = vmul.f32 %v68_v10, %v64_v6 }
  0x30   :  { %v71_v13 = vmul.f32 %v69_v11, %v65_v7 }
  0x31   :  { %78 = vst [vmem:[#allocation7] sm:$0xff] %v70_v12 }
  0x32   :  { %79 = vst [vmem:[#allocation7 + $0x8] sm:$0xff] %v71_v13 }
  0x33   :  { %159 = shalt.err (!%p156_p6)
}
  0x34   :  { %s160_s10 = scalar_lea.hbm %s243_s2, 256 }
  0x35   :  { %p161_p7 = scmp.ne.s32.totalorder %s243_s2, %s160_s10  ;;  %p164_p8 = scmp.lt.u32.totalorder %s160_s10, %s243_s2 }
  0x37   :  { %p166_p9 = pnand %p164_p8, %p161_p7 }
  0x39   :  { %169 = shalt.err (!%p166_p9)
}
  0x3a   :  { %91 = dma.vmem_to_hbm [thread:$0]  %s86_s7, 256, %s243_s2, [#allocation4], %s177_s19, %s177_s19, %s178_s20  }
  0x3b   :  { %174 = dma.done.wait [#allocation4], 256  }
  0x3c   :  { %175 = vsyncadd [#allocation4], 4294967040 }
  0x3d   :  { %95 = vsyncpa [#allocation3], 1 }
  0x3e   :  { %96 = vsyncpa [#allocation6], 1 }
  0x3f   :  { %97 = vsyncpa [#allocation4], 1 }

</bundles_post_ra>
